<compile_context>
chip_gen: v7x
topology: tpu7x:2x2x1
jax: 0.10.0
libtpu: 0.0.40
codegen_flags: <defaults>
</compile_context>

<pallas_src>
import functools
import math

import jax
import jax.numpy as jnp
from jax import lax
from jax.experimental import pallas as pl
from jax.experimental.pallas import tpu as pltpu


def _round_up(x, m):
    return (x + m - 1) // m * m


def _pick_tile(padded_dim, target):
    """Largest multiple of 128 <= target that evenly divides padded_dim."""
    t = min(padded_dim, max(128, (target // 128) * 128))
    while padded_dim % t:
        t -= 128
    return t


def _softplus(x):
    # Numerically stable softplus = log1p(exp(x)); linear for large x so it
    # never overflows to +inf in f32 (matches F.softplus' thresholding).
    return jnp.where(x > 20.0, x, jnp.log1p(jnp.exp(jnp.minimum(x, 20.0))))


def _fused_kernel(prior_ref, x_ref, wmu_ref, wrho_ref, epsw_ref,
                  bmu_ref, brho_ref, epsb_ref,
                  y_ref, klp_ref,
                  acc_ref, klacc_ref,
                  *, out_features, in_features, tn, tk,
                  mask_rows, mask_cols, matmul_dtype):
    i = pl.program_id(0)            # out_features tile index ("parallel")
    k = pl.program_id(1)            # in_features tile index (K reduction)
    nk = pl.num_programs(1)

    prior_mu = prior_ref[0]
    prior_logvar = prior_ref[1]
    half_plv = 0.5 * prior_logvar
    # 1 / (2 * prior_var), computed once per step as a tiny (1,1) vector (EUP).
    inv_2var = 0.5 * jnp.exp(jnp.full((1, 1), -prior_logvar, jnp.float32))

    @pl.when(k == 0)
    def _init():
        acc_ref[...] = jnp.zeros_like(acc_ref)
        klacc_ref[0] = jnp.float32(0.0)

    # ---- reparameterized weight sample for this (tn, tk) tile (f32 VPU) ----
    wmu = wmu_ref[...]
    w_sigma = _softplus(wrho_ref[...])
    weight = wmu + w_sigma * epsw_ref[...]

    # ---- matmul: acc += x_tile @ weight_tile^T (no explicit transpose) -----
    acc_ref[...] += lax.dot_general(
        x_ref[...].astype(matmul_dtype),
        weight.astype(matmul_dtype),
        dimension_numbers=(((1,), (1,)), ((), ())),
        preferred_element_type=jnp.float32)

    # ---- fused KL contribution of this weight tile (reuses w_sigma) --------
    kl_w = (half_plv - jnp.log(w_sigma)
            + (w_sigma * w_sigma + (wmu - prior_mu) ** 2) * inv_2var
            - 0.5)
    if mask_rows or mask_cols:
        valid = None
        if mask_rows:
            rows = lax.broadcasted_iota(jnp.int32, (tn, tk), 0) + i * tn
            valid = rows < out_features
        if mask_cols:
            cols = lax.broadcasted_iota(jnp.int32, (tn, tk), 1) + k * tk
            cvalid = cols < in_features
            valid = cvalid if valid is None else (valid & cvalid)
        kl_w = jnp.where(valid, kl_w, 0.0)
    klacc_ref[0] += jnp.sum(kl_w)

    # ---- finalize on the last K step ----------------------------------------
    @pl.when(k == nk - 1)
    def _finalize():
        bmu = bmu_ref[...]
        b_sigma = _softplus(brho_ref[...])
        bias = bmu + b_sigma * epsb_ref[...]                       # (1, tn)
        y_ref[...] = (acc_ref[...] + bias).astype(y_ref.dtype)

        kl_b = (half_plv - jnp.log(b_sigma)
                + (b_sigma * b_sigma + (bmu - prior_mu) ** 2) * inv_2var
                - 0.5)
        if mask_rows:
            bcols = lax.broadcasted_iota(jnp.int32, (1, tn), 1) + i * tn
            kl_b = jnp.where(bcols < out_features, kl_b, 0.0)

        prior_terms = (0.5 * prior_mu * prior_mu
                       + 0.5 * prior_logvar * prior_logvar)
        kl_total = (klacc_ref[0] + jnp.sum(kl_b)
                    + jnp.where(i == 0, prior_terms, 0.0))
        klp_ref[...] = jnp.full(klp_ref.shape, kl_total, jnp.float32)


def hierarchical_bayesian_linear(x, params, eps_w, eps_b, *,
                                 tile_n=512, tile_k=512,
                                 matmul_dtype=jnp.bfloat16):
    """Forward pass. Returns (y, kl): y (B, Out) f32, kl (1,) f32."""
    f32 = jnp.float32
    x = x.astype(f32)
    wmu = params["weight_mu"].astype(f32)
    wrho = params["weight_rho"].astype(f32)
    bmu = params["bias_mu"].reshape(1, -1).astype(f32)
    brho = params["bias_rho"].reshape(1, -1).astype(f32)
    epsw = eps_w.astype(f32)
    epsb = eps_b.reshape(1, -1).astype(f32)
    prior = jnp.stack([params["prior_mu"].reshape(()),
                       params["prior_logvar"].reshape(())]).astype(f32)

    batch, in_features = x.shape
    out_features = wmu.shape[0]

    b_p = _round_up(batch, 8)
    in_p = _round_up(in_features, 128)
    out_p = _round_up(out_features, 128)

    tn = _pick_tile(out_p, tile_n)
    tk = _pick_tile(in_p, tile_k)
    n_i = out_p // tn
    n_k = in_p // tk

    # TODO(synk): for very large batch, add a third (parallel) grid axis over
    # batch tiles instead of keeping the whole batch resident per block.
    pad_w = ((0, out_p - out_features), (0, in_p - in_features))
    pad_b = ((0, 0), (0, out_p - out_features))
    x_p = jnp.pad(x, ((0, b_p - batch), (0, in_p - in_features)))
    wmu_p = jnp.pad(wmu, pad_w)
    wrho_p = jnp.pad(wrho, pad_w)
    epsw_p = jnp.pad(epsw, pad_w)
    bmu_p = jnp.pad(bmu, pad_b)
    brho_p = jnp.pad(brho, pad_b)
    epsb_p = jnp.pad(epsb, pad_b)

    kernel = functools.partial(
        _fused_kernel,
        out_features=out_features, in_features=in_features,
        tn=tn, tk=tk,
        mask_rows=(out_p != out_features),
        mask_cols=(in_p != in_features),
        matmul_dtype=matmul_dtype)

    y_p, kl_parts = pl.pallas_call(
        kernel,
        grid=(n_i, n_k),
        in_specs=[
            pl.BlockSpec(memory_space=pltpu.MemorySpace.SMEM),    # prior scalars
            pl.BlockSpec((b_p, tk), lambda i, k: (0, k)),         # x
            pl.BlockSpec((tn, tk), lambda i, k: (i, k)),          # weight_mu
            pl.BlockSpec((tn, tk), lambda i, k: (i, k)),          # weight_rho
            pl.BlockSpec((tn, tk), lambda i, k: (i, k)),          # eps_w
            pl.BlockSpec((1, tn), lambda i, k: (0, i)),           # bias_mu
            pl.BlockSpec((1, tn), lambda i, k: (0, i)),           # bias_rho
            pl.BlockSpec((1, tn), lambda i, k: (0, i)),           # eps_b
        ],
        out_specs=[
            pl.BlockSpec((b_p, tn), lambda i, k: (0, i)),         # y
            pl.BlockSpec((1, 1, 128), lambda i, k: (i, 0, 0)),    # KL partials
        ],
        out_shape=[
            jax.ShapeDtypeStruct((b_p, out_p), f32),
            jax.ShapeDtypeStruct((n_i, 1, 128), f32),
        ],
        scratch_shapes=[
            pltpu.VMEM((b_p, tn), f32),        # f32 matmul accumulator
            pltpu.SMEM((1,), f32),             # per-out-tile KL accumulator
        ],
        compiler_params=pltpu.CompilerParams(
            dimension_semantics=("parallel", "arbitrary")),
    )(prior, x_p, wmu_p, wrho_p, epsw_p, bmu_p, brho_p, epsb_p)

    y = y_p[:batch, :out_features]
    kl = jnp.sum(kl_parts[:, 0, 0]).reshape(1)
    return y, kl


def init_params(key, in_features, out_features):
    """Deterministic init mirroring the PyTorch reset_parameters()."""
    k_w, k_b = jax.random.split(key)
    # kaiming_uniform_(a=sqrt(5)) -> bound = 1/sqrt(fan_in)
    bound_w = 1.0 / math.sqrt(in_features)
    weight_mu = jax.random.uniform(
        k_w, (out_features, in_features), jnp.float32, -bound_w, bound_w)
    weight_rho = jnp.full((out_features, in_features), -5.0, jnp.float32)
    bias_mu = jax.random.uniform(k_b, (out_features,), jnp.float32, -0.1, 0.1)
    bias_rho = jnp.full((out_features,), -5.0, jnp.float32)
    prior_mu = jnp.zeros((1,), jnp.float32)
    prior_logvar = jnp.zeros((1,), jnp.float32)
    return {
        "weight_mu": weight_mu, "weight_rho": weight_rho,
        "bias_mu": bias_mu, "bias_rho": bias_rho,
        "prior_mu": prior_mu, "prior_logvar": prior_logvar,
    }


def _reference(x, params, eps_w, eps_b, matmul_dtype=jnp.bfloat16):
    """Pure-JAX reference (same math as the torch module; same matmul dtype)."""
    w_sigma = jnp.log1p(jnp.exp(params["weight_rho"]))
    b_sigma = jnp.log1p(jnp.exp(params["bias_rho"]))
    w = params["weight_mu"] + w_sigma * eps_w
    b = params["bias_mu"] + b_sigma * eps_b
    y = jnp.dot(x.astype(matmul_dtype), w.astype(matmul_dtype).T,
                preferred_element_type=jnp.float32) + b

    prior_mu = params["prior_mu"][0]
    prior_var = jnp.exp(params["prior_logvar"][0])

    def kl_div(mu, sigma):
        return jnp.sum(jnp.log(jnp.sqrt(prior_var) / sigma)
                       + (sigma ** 2 + (mu - prior_mu) ** 2) / (2 * prior_var)
                       - 0.5)

    kl = (kl_div(params["weight_mu"], w_sigma)
          + kl_div(params["bias_mu"], b_sigma)
          + 0.5 * prior_mu ** 2
          + 0.5 * params["prior_logvar"][0] ** 2)
    return y, kl.reshape(1)


if __name__ == "__main__":
    in_features, out_features, batch = 32, 16, 8

    key = jax.random.PRNGKey(0)
    k_param, k_x, k_ew, k_eb = jax.random.split(key, 4)

    params = init_params(k_param, in_features, out_features)
    x = jax.random.normal(k_x, (batch, in_features), jnp.float32)
    eps_w = jax.random.normal(k_ew, (out_features, in_features), jnp.float32)
    eps_b = jax.random.normal(k_eb, (out_features,), jnp.float32)

    y, kl = hierarchical_bayesian_linear(x, params, eps_w, eps_b)
    jax.block_until_ready((y, kl))

    y_ref, kl_ref = _reference(x, params, eps_w, eps_b)
    assert y.shape == (batch, out_features)
    assert kl.shape == (1,)
    assert jnp.allclose(y, y_ref, atol=1e-3, rtol=1e-3), (
        f"max |dy| = {jnp.max(jnp.abs(y - y_ref))}")
    assert jnp.allclose(kl, kl_ref, atol=1e-2, rtol=1e-4), (
        f"kl={kl}, kl_ref={kl_ref}")

    print("KERNEL_OK")
</pallas_src>

<mosaic_0001>
module attributes {stable_mosaic.version = 11 : i64} {
  func.func @_fused_kernel(%arg0: i32, %arg1: i32, %arg2: memref<2xf32, #tpu.memory_space<smem>>, %arg3: memref<8x128xf32, #tpu.memory_space<vmem>>, %arg4: memref<128x128xf32, #tpu.memory_space<vmem>>, %arg5: memref<128x128xf32, #tpu.memory_space<vmem>>, %arg6: memref<128x128xf32, #tpu.memory_space<vmem>>, %arg7: memref<1x128xf32, #tpu.memory_space<vmem>>, %arg8: memref<1x128xf32, #tpu.memory_space<vmem>>, %arg9: memref<1x128xf32, #tpu.memory_space<vmem>>, %arg10: memref<8x128xf32, #tpu.memory_space<vmem>>, %arg11: memref<1x1x128xf32, #tpu.memory_space<vmem>>, %arg12: memref<8x128xf32, #tpu.memory_space<vmem>>, %arg13: memref<1xf32, #tpu.memory_space<smem>>) attributes {dimension_semantics = [#tpu.dimension_semantics<parallel>, #tpu.dimension_semantics<arbitrary>], iteration_bounds = array<i64: 1, 1>, scalar_prefetch = 0 : i64, scratch_operands = 2 : i64, tpu.core_type = #tpu.core_type<tc>, window_params = [{transform_indices = @transform_0, window_bounds = array<i64: 2>}, {transform_indices = @transform_1, window_bounds = array<i64: 8, 128>}, {transform_indices = @transform_2, window_bounds = array<i64: 128, 128>}, {transform_indices = @transform_3, window_bounds = array<i64: 128, 128>}, {transform_indices = @transform_4, window_bounds = array<i64: 128, 128>}, {transform_indices = @transform_5, window_bounds = array<i64: 1, 128>}, {transform_indices = @transform_6, window_bounds = array<i64: 1, 128>}, {transform_indices = @transform_7, window_bounds = array<i64: 1, 128>}, {transform_indices = @transform_8, window_bounds = array<i64: 8, 128>}, {transform_indices = @transform_9, window_bounds = array<i64: 1, 1, 128>}]} {
    %c0 = arith.constant 0 : index
    %0 = memref.load %arg2[%c0] : memref<2xf32, #tpu.memory_space<smem>>
    %c1 = arith.constant 1 : index
    %1 = memref.load %arg2[%c1] : memref<2xf32, #tpu.memory_space<smem>>
    %cst = arith.constant 5.000000e-01 : f32
    %2 = arith.mulf %cst, %1 : f32
    %cst_0 = arith.constant 0.000000e+00 : f32
    %3 = arith.subf %cst_0, %1 : f32
    %4 = vector.broadcast %3 : f32 to vector<1x1xf32>
    %5 = math.exp %4 : vector<1x1xf32>
    %cst_1 = arith.constant 5.000000e-01 : f32
    %6 = vector.broadcast %cst_1 : f32 to vector<1x1xf32>
    %7 = arith.mulf %6, %5 : vector<1x1xf32>
    %c0_i32 = arith.constant 0 : i32
    %8 = arith.cmpi eq, %arg1, %c0_i32 : i32
    %9 = arith.extui %8 : i1 to i32
    %c0_i32_2 = arith.constant 0 : i32
    %10 = arith.cmpi ne, %9, %c0_i32_2 : i32
    scf.if %10 {
      %cst_26 = arith.constant 0.000000e+00 : f32
      %68 = vector.broadcast %cst_26 : f32 to vector<8x128xf32>
      %c0_27 = arith.constant 0 : index
      %c0_28 = arith.constant 0 : index
      %69 = vector.load %arg12[%c0_27, %c0_28] : memref<8x128xf32, #tpu.memory_space<vmem>>, vector<8x128xf32>
      tpu.vector_store %arg12[%c0_27, %c0_28], %68 {strides = array<i32>} : memref<8x128xf32, #tpu.memory_space<vmem>>, vector<8x128xf32>,
      %cst_29 = arith.constant 0.000000e+00 : f32
      %c0_30 = arith.constant 0 : index
      %70 = memref.load %arg13[%c0_30] : memref<1xf32, #tpu.memory_space<smem>>
      memref.store %cst_29, %arg13[%c0_30] : memref<1xf32, #tpu.memory_space<smem>>
    } else {
    }
    %c0_3 = arith.constant 0 : index
    %c0_4 = arith.constant 0 : index
    %11 = vector.load %arg4[%c0_3, %c0_4] : memref<128x128xf32, #tpu.memory_space<vmem>>, vector<128x128xf32>
    %c0_5 = arith.constant 0 : index
    %c0_6 = arith.constant 0 : index
    %12 = vector.load %arg5[%c0_5, %c0_6] : memref<128x128xf32, #tpu.memory_space<vmem>>, vector<128x128xf32>
    %cst_7 = arith.constant 2.000000e+01 : f32
    %13 = vector.broadcast %cst_7 : f32 to vector<128x128xf32>
    %14 = arith.cmpf ogt, %12, %13 : vector<128x128xf32>
    %cst_8 = arith.constant 2.000000e+01 : f32
    %15 = vector.broadcast %cst_8 : f32 to vector<128x128xf32>
    %16 = arith.minimumf %12, %15 : vector<128x128xf32>
    %17 = math.exp %16 : vector<128x128xf32>
    %18 = math.log1p %17 : vector<128x128xf32>
    %19 = arith.select %14, %12, %18 : vector<128x128xi1>, vector<128x128xf32>
    %c0_9 = arith.constant 0 : index
    %c0_10 = arith.constant 0 : index
    %20 = vector.load %arg6[%c0_9, %c0_10] : memref<128x128xf32, #tpu.memory_space<vmem>>, vector<128x128xf32>
    %21 = arith.mulf %19, %20 : vector<128x128xf32>
    %22 = arith.addf %11, %21 : vector<128x128xf32>
    %c0_11 = arith.constant 0 : index
    %c0_12 = arith.constant 0 : index
    %23 = vector.load %arg12[%c0_11, %c0_12] : memref<8x128xf32, #tpu.memory_space<vmem>>, vector<8x128xf32>
    %c0_13 = arith.constant 0 : index
    %c0_14 = arith.constant 0 : index
    %24 = vector.load %arg3[%c0_13, %c0_14] : memref<8x128xf32, #tpu.memory_space<vmem>>, vector<8x128xf32>
    %25 = arith.truncf %24 : vector<8x128xf32> to vector<8x128xbf16>
    %26 = arith.truncf %22 : vector<128x128xf32> to vector<128x128xbf16>
    %cst_15 = arith.constant dense<0.000000e+00> : vector<8x128xf32>
    %27 = tpu.matmul %25, %26, %cst_15 {dimension_numbers = #tpu.dot_dimension_numbers<[1], [1], [0], [0], [0, 0, 1, 0], [], []>} : vector<8x128xbf16>, vector<128x128xbf16>, vector<8x128xf32> -> vector<8x128xf32>
    %28 = arith.addf %23, %27 : vector<8x128xf32>
    %c0_16 = arith.constant 0 : index
    %c0_17 = arith.constant 0 : index
    %29 = vector.load %arg12[%c0_16, %c0_17] : memref<8x128xf32, #tpu.memory_space<vmem>>, vector<8x128xf32>
    tpu.vector_store %arg12[%c0_16, %c0_17], %28 {strides = array<i32>} : memref<8x128xf32, #tpu.memory_space<vmem>>, vector<8x128xf32>,
    %30 = math.log %19 : vector<128x128xf32>
    %31 = vector.broadcast %2 : f32 to vector<128x128xf32>
    %32 = arith.subf %31, %30 : vector<128x128xf32>
    %33 = arith.mulf %19, %19 : vector<128x128xf32>
    %34 = vector.broadcast %0 : f32 to vector<128x128xf32>
    %35 = arith.subf %11, %34 : vector<128x128xf32>
    %36 = arith.mulf %35, %35 : vector<128x128xf32>
    %37 = arith.addf %33, %36 : vector<128x128xf32>
    %38 = vector.broadcast %7 : vector<1x1xf32> to vector<128x128xf32>
    %39 = arith.mulf %37, %38 : vector<128x128xf32>
    %40 = arith.addf %32, %39 : vector<128x128xf32>
    %cst_18 = arith.constant 5.000000e-01 : f32
    %41 = vector.broadcast %cst_18 : f32 to vector<128x128xf32>
    %42 = arith.subf %40, %41 : vector<128x128xf32>
    %43 = tpu.iota {dimensions = array<i32: 0>} : vector<128x128xi32>
    %c128_i32 = arith.constant 128 : i32
    %44 = arith.muli %arg0, %c128_i32 : i32
    %45 = vector.broadcast %44 : i32 to vector<128x128xi32>
    %46 = arith.addi %43, %45 : vector<128x128xi32>
    %c16_i32 = arith.constant 16 : i32
    %47 = vector.broadcast %c16_i32 : i32 to vector<128x128xi32>
    %48 = arith.cmpi slt, %46, %47 : vector<128x128xi32>
    %49 = tpu.iota {dimensions = array<i32: 1>} : vector<128x128xi32>
    %c128_i32_19 = arith.constant 128 : i32
    %50 = arith.muli %arg1, %c128_i32_19 : i32
    %51 = vector.broadcast %50 : i32 to vector<128x128xi32>
    %52 = arith.addi %49, %51 : vector<128x128xi32>
    %c32_i32 = arith.constant 32 : i32
    %53 = vector.broadcast %c32_i32 : i32 to vector<128x128xi32>
    %54 = arith.cmpi slt, %52, %53 : vector<128x128xi32>
    %55 = arith.andi %48, %54 : vector<128x128xi1>
    %cst_20 = arith.constant 0.000000e+00 : f32
    %56 = vector.broadcast %cst_20 : f32 to vector<128x128xf32>
    %57 = arith.select %55, %42, %56 : vector<128x128xi1>, vector<128x128xf32>
    %c0_21 = arith.constant 0 : index
    %58 = memref.load %arg13[%c0_21] : memref<1xf32, #tpu.memory_space<smem>>
    %59 = vector.shape_cast %57 : vector<128x128xf32> to vector<1x128x128xf32>
    %cst_22 = arith.constant dense<0.000000e+00> : vector<1xf32>
    %60 = vector.multi_reduction <add>, %59, %cst_22 [1, 2] : vector<1x128x128xf32> to vector<1xf32>
    %61 = vector.shape_cast %60 : vector<1xf32> to vector<1x1x1xf32>
    %62 = vector.extract %61[0, 0, 0] : f32 from vector<1x1x1xf32>
    %63 = arith.addf %58, %62 : f32
    %c0_23 = arith.constant 0 : index
    %64 = memref.load %arg13[%c0_23] : memref<1xf32, #tpu.memory_space<smem>>
    memref.store %63, %arg13[%c0_23] : memref<1xf32, #tpu.memory_space<smem>>
    %c0_i32_24 = arith.constant 0 : i32
    %65 = arith.cmpi eq, %arg1, %c0_i32_24 : i32
    %66 = arith.extui %65 : i1 to i32
    %c0_i32_25 = arith.constant 0 : i32
    %67 = arith.cmpi ne, %66, %c0_i32_25 : i32
    scf.if %67 {
      %c0_26 = arith.constant 0 : index
      %c0_27 = arith.constant 0 : index
      %68 = vector.load %arg7[%c0_26, %c0_27] : memref<1x128xf32, #tpu.memory_space<vmem>>, vector<1x128xf32>
      %c0_28 = arith.constant 0 : index
      %c0_29 = arith.constant 0 : index
      %69 = vector.load %arg8[%c0_28, %c0_29] : memref<1x128xf32, #tpu.memory_space<vmem>>, vector<1x128xf32>
      %cst_30 = arith.constant 2.000000e+01 : f32
      %70 = vector.broadcast %cst_30 : f32 to vector<1x128xf32>
      %71 = arith.cmpf ogt, %69, %70 : vector<1x128xf32>
      %cst_31 = arith.constant 2.000000e+01 : f32
      %72 = vector.broadcast %cst_31 : f32 to vector<1x128xf32>
      %73 = arith.minimumf %69, %72 : vector<1x128xf32>
      %74 = math.exp %73 : vector<1x128xf32>
      %75 = math.log1p %74 : vector<1x128xf32>
      %76 = arith.select %71, %69, %75 : vector<1x128xi1>, vector<1x128xf32>
      %c0_32 = arith.constant 0 : index
      %c0_33 = arith.constant 0 : index
      %77 = vector.load %arg9[%c0_32, %c0_33] : memref<1x128xf32, #tpu.memory_space<vmem>>, vector<1x128xf32>
      %78 = arith.mulf %76, %77 : vector<1x128xf32>
      %79 = arith.addf %68, %78 : vector<1x128xf32>
      %c0_34 = arith.constant 0 : index
      %c0_35 = arith.constant 0 : index
      %80 = vector.load %arg12[%c0_34, %c0_35] : memref<8x128xf32, #tpu.memory_space<vmem>>, vector<8x128xf32>
      %81 = vector.broadcast %79 : vector<1x128xf32> to vector<8x128xf32>
      %82 = arith.addf %80, %81 : vector<8x128xf32>
      %c0_36 = arith.constant 0 : index
      %c0_37 = arith.constant 0 : index
      %83 = vector.load %arg10[%c0_36, %c0_37] : memref<8x128xf32, #tpu.memory_space<vmem>>, vector<8x128xf32>
      tpu.vector_store %arg10[%c0_36, %c0_37], %82 {strides = array<i32>} : memref<8x128xf32, #tpu.memory_space<vmem>>, vector<8x128xf32>,
      %84 = math.log %76 : vector<1x128xf32>
      %85 = vector.broadcast %2 : f32 to vector<1x128xf32>
      %86 = arith.subf %85, %84 : vector<1x128xf32>
      %87 = arith.mulf %76, %76 : vector<1x128xf32>
      %88 = vector.broadcast %0 : f32 to vector<1x128xf32>
      %89 = arith.subf %68, %88 : vector<1x128xf32>
      %90 = arith.mulf %89, %89 : vector<1x128xf32>
      %91 = arith.addf %87, %90 : vector<1x128xf32>
      %92 = vector.broadcast %7 : vector<1x1xf32> to vector<1x128xf32>
      %93 = arith.mulf %91, %92 : vector<1x128xf32>
      %94 = arith.addf %86, %93 : vector<1x128xf32>
      %cst_38 = arith.constant 5.000000e-01 : f32
      %95 = vector.broadcast %cst_38 : f32 to vector<1x128xf32>
      %96 = arith.subf %94, %95 : vector<1x128xf32>
      %97 = tpu.iota {dimensions = array<i32: 1>} : vector<1x128xi32>
      %c128_i32_39 = arith.constant 128 : i32
      %98 = arith.muli %arg0, %c128_i32_39 : i32
      %99 = vector.broadcast %98 : i32 to vector<1x128xi32>
      %100 = arith.addi %97, %99 : vector<1x128xi32>
      %c16_i32_40 = arith.constant 16 : i32
      %101 = vector.broadcast %c16_i32_40 : i32 to vector<1x128xi32>
      %102 = arith.cmpi slt, %100, %101 : vector<1x128xi32>
      %cst_41 = arith.constant 0.000000e+00 : f32
      %103 = vector.broadcast %cst_41 : f32 to vector<1x128xf32>
      %104 = arith.select %102, %96, %103 : vector<1x128xi1>, vector<1x128xf32>
      %cst_42 = arith.constant 5.000000e-01 : f32
      %105 = arith.mulf %cst_42, %0 : f32
      %106 = arith.mulf %105, %0 : f32
      %cst_43 = arith.constant 5.000000e-01 : f32
      %107 = arith.mulf %cst_43, %1 : f32
      %108 = arith.mulf %107, %1 : f32
      %109 = arith.addf %106, %108 : f32
      %c0_44 = arith.constant 0 : index
      %110 = memref.load %arg13[%c0_44] : memref<1xf32, #tpu.memory_space<smem>>
      %111 = vector.shape_cast %104 : vector<1x128xf32> to vector<1x1x128xf32>
      %cst_45 = arith.constant dense<0.000000e+00> : vector<1xf32>
      %112 = vector.multi_reduction <add>, %111, %cst_45 [1, 2] : vector<1x1x128xf32> to vector<1xf32>
      %113 = vector.shape_cast %112 : vector<1xf32> to vector<1x1x1xf32>
      %114 = vector.extract %113[0, 0, 0] : f32 from vector<1x1x1xf32>
      %115 = arith.addf %110, %114 : f32
      %c0_i32_46 = arith.constant 0 : i32
      %116 = arith.cmpi eq, %arg0, %c0_i32_46 : i32
      %cst_47 = arith.constant 0.000000e+00 : f32
      %117 = arith.select %116, %109, %cst_47 : f32
      %118 = arith.addf %115, %117 : f32
      %119 = vector.broadcast %118 : f32 to vector<1x1x128xf32>
      %c0_48 = arith.constant 0 : index
      %c0_49 = arith.constant 0 : index
      %c0_50 = arith.constant 0 : index
      %120 = vector.load %arg11[%c0_48, %c0_49, %c0_50] : memref<1x1x128xf32, #tpu.memory_space<vmem>>, vector<1x1x128xf32>
      tpu.vector_store %arg11[%c0_48, %c0_49, %c0_50], %119 {strides = array<i32>} : memref<1x1x128xf32, #tpu.memory_space<vmem>>, vector<1x1x128xf32>,
    } else {
    }
    return
  }
  func.func @transform_0(%arg0: i32, %arg1: i32) -> i32 {
    %c0_i32 = arith.constant 0 : i32
    %c0_i32_0 = arith.constant 0 : i32
    return %c0_i32 : i32
  }
  func.func @transform_1(%arg0: i32, %arg1: i32) -> (i32, i32) {
    %c0_i32 = arith.constant 0 : i32
    %c0_i32_0 = arith.constant 0 : i32
    return %c0_i32, %arg1 : i32, i32
  }
  func.func @transform_2(%arg0: i32, %arg1: i32) -> (i32, i32) {
    %c0_i32 = arith.constant 0 : i32
    return %arg0, %arg1 : i32, i32
  }
  func.func @transform_3(%arg0: i32, %arg1: i32) -> (i32, i32) {
    %c0_i32 = arith.constant 0 : i32
    return %arg0, %arg1 : i32, i32
  }
  func.func @transform_4(%arg0: i32, %arg1: i32) -> (i32, i32) {
    %c0_i32 = arith.constant 0 : i32
    return %arg0, %arg1 : i32, i32
  }
  func.func @transform_5(%arg0: i32, %arg1: i32) -> (i32, i32) {
    %c0_i32 = arith.constant 0 : i32
    %c0_i32_0 = arith.constant 0 : i32
    return %c0_i32, %arg0 : i32, i32
  }
  func.func @transform_6(%arg0: i32, %arg1: i32) -> (i32, i32) {
    %c0_i32 = arith.constant 0 : i32
    %c0_i32_0 = arith.constant 0 : i32
    return %c0_i32, %arg0 : i32, i32
  }
  func.func @transform_7(%arg0: i32, %arg1: i32) -> (i32, i32) {
    %c0_i32 = arith.constant 0 : i32
    %c0_i32_0 = arith.constant 0 : i32
    return %c0_i32, %arg0 : i32, i32
  }
  func.func @transform_8(%arg0: i32, %arg1: i32) -> (i32, i32) {
    %c0_i32 = arith.constant 0 : i32
    %c0_i32_0 = arith.constant 0 : i32
    return %c0_i32, %arg0 : i32, i32
  }
  func.func @transform_9(%arg0: i32, %arg1: i32) -> (i32, i32, i32) {
    %c0_i32 = arith.constant 0 : i32
    %c0_i32_0 = arith.constant 0 : i32
    %c0_i32_1 = arith.constant 0 : i32
    return %arg0, %c0_i32, %c0_i32_0 : i32, i32, i32
  }
}

</mosaic_0001>

<bundles_post_ra>
// kernel: tpu_custom_call.1
= control target key start
LH: loop header
LB: loop body
LE: loop exit
PB: predicated region body
PF: predicated region fallthrough
CT: control target
= control target key end

     0   :  { %15 = vsyncpa [#allocation7], 0  ;;  %s1664_s0 = inlined_call_operand.hbm [shape: f32[2], index: 0, kind: input, shape index: {}]   ;;  %s1665_s1 = inlined_call_operand.hbm [shape: f32[8,128], index: 1, kind: input, shape index: {}]   ;;  %s1666_s2 = inlined_call_operand.hbm [shape: f32[128,128], index: 2, kind: input, shape index: {}]   ;;  %s1667_s3 = inlined_call_operand.hbm [shape: f32[128,128], index: 3, kind: input, shape index: {}]   ;;  %s1668_s4 = inlined_call_operand.hbm [shape: f32[128,128], index: 4, kind: input, shape index: {}]   ;;  %s1669_s5 = inlined_call_operand.vmem [shape: f32[1,128], index: 5, kind: input, shape index: {}]   ;;  %s1670_s6 = inlined_call_operand.vmem [shape: f32[1,128], index: 6, kind: input, shape index: {}]   ;;  %s1671_s7 = inlined_call_operand.vmem [shape: f32[1,128], index: 7, kind: input, shape index: {}]   ;;  %s1672_s8 = inlined_call_operand.hbm [shape: f32[8,128], index: 8, kind: output, shape index: {0}]   ;;  %s1673_s9 = inlined_call_operand.hbm [shape: f32[1,1,128], index: 9, kind: output, shape index: {1}]  }
   0x1   :  { %16 = vsyncpa [#allocation5], 0 }
   0x2   :  { %17 = vsyncpa [#allocation10], 0 }
   0x3   :  { %18 = vsyncpa [#allocation13], 0 }
   0x4   :  { %19 = vsyncpa [#allocation6], 0 }
   0x5   :  { %20 = vsyncpa [#allocation16], 0  ;;  %s1139_s30 = smov [#allocation9]   ;;  %s985_s13 = scalar_lea.hbm %s1666_s2, 2048 }
   0x6   :  { %s44_s10 = sshll.u32 %s1139_s30, 4  ;;  %p986_p0 = scmp.ne.s32.totalorder %s1666_s2, %s985_s13  ;;  %s45_s10 = int_to_ptr.vmem [resolvable:$true] %s44_s10 }
   0x7   :  { %p989_p1 = scmp.lt.u32.totalorder %s985_s13, %s1666_s2 }
   0x9   :  { %p991_p2 = pnand %p989_p1, %p986_p0 }
   0xb   :  { %994 = shalt.err (!%p991_p2)
}
   0xc   :  { %s995_s18 = scalar_lea.vmem %s45_s10, 2048  ;;  %p1000_p4 = scmp.lt.s32.totalorder %s45_s10, %s45_s10 }
   0xd   :  { %p996_p3 = scmp.ne.s32.totalorder %s45_s10, %s995_s18  ;;  %p1001_p5 = scmp.lt.s32.totalorder %s995_s18, %s995_s18 }
   0xf   :  { %p1002_p6 = por %p1001_p5, %p1000_p4 }
  0x11   :  { %p1003_p7 = pnand %p1002_p6, %p996_p3 }
  0x13   :  { %1006 = shalt.err (!%p1003_p7)
}
  0x14   :  { %s1140_s19 = smov 128   ;;  %s1141_s20 = smov 8  }
  0x15   :  { %50 = dma.hbm_to_vmem [thread:$0]  %s1666_s2, 2048, %s45_s10, [#allocation10], %s1140_s19, %s1140_s19, %s1141_s20  }
  0x16   :  { %s1007_s25 = scalar_lea.hbm %s1664_s0, 16 }
  0x17   :  { %p1008_p8 = scmp.ne.s32.totalorder %s1664_s0, %s1007_s25  ;;  %p1011_p9 = scmp.lt.u32.totalorder %s1007_s25, %s1664_s0 }
  0x19   :  { %p1013_p10 = pnand %p1011_p9, %p1008_p8 }
  0x1b   :  { %1016 = shalt.err (!%p1013_p10)
}
  0x1c   :  { %s1142_s30 = smov [#allocation4]   ;;  %s1143_s2 = smov [#allocation8]  }
  0x1d   :  { %28 = dma.hbm_to_smem %s1664_s0, 16, %s1142_s30, [#allocation7]  }
  0x1e   :  { %s35_s10 = sshll.u32 %s1143_s2, 4  ;;  %s1144_s13 = smov [#allocation11]   ;;  %s36_s10 = int_to_ptr.vmem [resolvable:$true] %s35_s10 }
  0x1f   :  { %s56_s14 = sshll.u32 %s1144_s13, 4  ;;  %s1017_s17 = scalar_lea.hbm %s1665_s1, 128  ;;  %s1227_s14 = int_to_ptr.vmem [resolvable:$true] %s56_s14 }
  0x20   :  { %p1018_p11 = scmp.ne.s32.totalorder %s1665_s1, %s1017_s17  ;;  %p1021_p12 = scmp.lt.u32.totalorder %s1017_s17, %s1665_s1 }
  0x22   :  { %p1023_p13 = pnand %p1021_p12, %p1018_p11 }
  0x24   :  { %1026 = shalt.err (!%p1023_p13)
}
  0x25   :  { %s1027_s0 = scalar_lea.vmem %s36_s10, 128  ;;  %p1032_p1 = scmp.lt.s32.totalorder %s36_s10, %s36_s10 }
  0x26   :  { %p1028_p0 = scmp.ne.s32.totalorder %s36_s10, %s1027_s0  ;;  %p1033_p2 = scmp.lt.s32.totalorder %s1027_s0, %s1027_s0 }
  0x28   :  { %p1034_p3 = por %p1033_p2, %p1032_p1 }
  0x2a   :  { %p1035_p4 = pnand %p1034_p3, %p1028_p0 }
  0x2c   :  { %1038 = shalt.err (!%p1035_p4)
}
  0x2d   :  { %38 = dma.hbm_to_vmem [thread:$0]  %s1665_s1, 128, %s36_s10, [#allocation5]  }
  0x2e   :  { %s1039_s28 = scalar_lea.hbm %s1667_s3, 2048 }
  0x2f   :  { %p1040_p5 = scmp.ne.s32.totalorder %s1667_s3, %s1039_s28  ;;  %p1043_p6 = scmp.lt.u32.totalorder %s1039_s28, %s1667_s3 }
  0x31   :  { %p1045_p7 = pnand %p1043_p6, %p1040_p5 }
  0x33   :  { %1048 = shalt.err (!%p1045_p7)
}
  0x34   :  { %s1049_s2 = scalar_lea.vmem %s1227_s14, 2048  ;;  %p1054_p9 = scmp.lt.s32.totalorder %s1227_s14, %s1227_s14 }
  0x35   :  { %p1050_p8 = scmp.ne.s32.totalorder %s1227_s14, %s1049_s2  ;;  %p1055_p10 = scmp.lt.s32.totalorder %s1049_s2, %s1049_s2 }
  0x37   :  { %p1056_p11 = por %p1055_p10, %p1054_p9 }
  0x39   :  { %p1057_p12 = pnand %p1056_p11, %p1050_p8 }
  0x3b   :  { %1060 = shalt.err (!%p1057_p12)
}
  0x3c   :  { %62 = dma.hbm_to_vmem [thread:$0]  %s1667_s3, 2048, %s1227_s14, [#allocation10], %s1140_s19, %s1140_s19, %s1141_s20  }
  0x3d   :  { %s1145_s13 = smov [#allocation12]   ;;  %s1061_s18 = scalar_lea.hbm %s1668_s4, 2048 }
  0x3e   :  { %s68_s15 = sshll.u32 %s1145_s13, 4  ;;  %p1062_p13 = scmp.ne.s32.totalorder %s1668_s4, %s1061_s18  ;;  %s69_s15 = int_to_ptr.vmem [resolvable:$true] %s68_s15 }
  0x3f   :  { %p1065_p0 = scmp.lt.u32.totalorder %s1061_s18, %s1668_s4 }
  0x41   :  { %p1067_p1 = pnand %p1065_p0, %p1062_p13 }
  0x43   :  { %1070 = shalt.err (!%p1067_p1)
}
  0x44   :  { %s1071_s24 = scalar_lea.vmem %s69_s15, 2048  ;;  %p1076_p3 = scmp.lt.s32.totalorder %s69_s15, %s69_s15 }
  0x45   :  { %p1072_p2 = scmp.ne.s32.totalorder %s69_s15, %s1071_s24  ;;  %p1077_p4 = scmp.lt.s32.totalorder %s1071_s24, %s1071_s24 }
  0x47   :  { %p1078_p5 = por %p1077_p4, %p1076_p3 }
  0x49   :  { %p1079_p6 = pnand %p1078_p5, %p1072_p2 }
  0x4b   :  { %1082 = shalt.err (!%p1079_p6)
}
  0x4c   :  { %74 = dma.hbm_to_vmem [thread:$0]  %s1668_s4, 2048, %s69_s15, [#allocation13], %s1140_s19, %s1140_s19, %s1141_s20  }
  0x4d   :  { %1127 = dma.done.wait [#allocation7], 16  }
  0x4e   :  { %1128 = vsyncadd [#allocation7], 4294967280 }
  0x4f   :  { %1129 = dma.done.wait [#allocation5], 128  }
  0x50   :  { %1130 = vsyncadd [#allocation5], 4294967168 }
  0x51   :  { %1131 = dma.done.wait [#allocation10], 4096  }
  0x52   :  { %1132 = vsyncadd [#allocation10], 4294963200 }
  0x53   :  { %1133 = dma.done.wait [#allocation13], 2048  }
  0x54   :  { %1134 = vsyncadd [#allocation13], 4294965248 }
  0x55   :  { %96 = sfence }
  0x56   :  { %v1276_v0 = vld [vmem:[#allocation11] sm:$0xff]  ;;  %v1146_v1 = vmov 0.0   ;;  %v1279_v2 = vld [vmem:[#allocation11 + $0x8] sm:$0xff]  ;;  %v1283_v6 = vld [vmem:[#allocation11 + $0x10] sm:$0xff]  ;;  %v683_v46 = vlaneseq  ;;  %s1399_s4 = sld [smem:[#allocation4 + $0x1]]  ;;  %s1402_s19 = sld [smem:[#allocation4]] }
  0x57   :  { %874 = vmatprep.subr.bf16.mxu0 %v1146_v1  ;;  %v161_v3 = vmin.f32 %v1276_v0, 20.0  ;;  %v162_v4 = vmin.f32 %v1279_v2, 20.0  ;;  %v1285_v7 = vld [vmem:[#allocation11 + $0x18] sm:$0xff]  ;;  %v163_v9 = vmin.f32 %v1283_v6, 20.0  ;;  %v1289_v11 = vld [vmem:[#allocation11 + $0x20] sm:$0xff]  ;;  %v1291_v13 = vld [vmem:[#allocation11 + $0x28] sm:$0xff] }
  0x58   :  { %v164_v10 = vmin.f32 %v1285_v7, 20.0  ;;  %v1293_v15 = vld [vmem:[#allocation11 + $0x30] sm:$0xff]  ;;  %v165_v16 = vmin.f32 %v1289_v11, 20.0  ;;  %v166_v17 = vmin.f32 %v1291_v13, 20.0  ;;  %v1297_v18 = vld [vmem:[#allocation11 + $0x38] sm:$0xff]  ;;  %v1299_v19 = vld [vmem:[#allocation11 + $0x40] sm:$0xff] }
  0x59   :  { %v177_v5 = vmul.f32 1.442695, %v161_v3  ;;  %v179_v8 = vmul.f32 1.442695, %v162_v4  ;;  %v181_v12 = vmul.f32 1.442695, %v163_v9 }
  0x5a   :  { %v183_v14 = vmul.f32 1.442695, %v164_v10  ;;  %v185_v20 = vmul.f32 1.442695, %v165_v16  ;;  %v187_v21 = vmul.f32 1.442695, %v166_v17 }
  0x5b   :  { %909 = vpow2.f32 %v177_v5  ;;  %v167_v22 = vmin.f32 %v1293_v15, 20.0  ;;  %v168_v23 = vmin.f32 %v1297_v18, 20.0  ;;  %v169_v24 = vmin.f32 %v1299_v19, 20.0  ;;  %v1304_v27 = vld [vmem:[#allocation11 + $0x48] sm:$0xff]  ;;  %v1306_v30 = vld [vmem:[#allocation11 + $0x50] sm:$0xff]  ;;  %v1310_v42 = vld [vmem:[#allocation11 + $0x58] sm:$0xff] }
  0x5c   :  { %911 = vpow2.f32 %v179_v8  ;;  %v170_v33 = vmin.f32 %v1304_v27, 20.0  ;;  %v171_v38 = vmin.f32 %v1306_v30, 20.0  ;;  %vm145_vm0 = vcmp.gt.f32.partialorder %v1276_v0, 20.0  ;;  %v372_v60 = vld [vmem:[#allocation12 + $0x18] sm:$0xff]  ;;  %s101_s20 = ssub.f32 0.0, %s1399_s4  ;;  %s100_s25 = smul.f32 0.5, %s1399_s4 }
  0x5d   :  { %913 = vpow2.f32 %v181_v12  ;;  %v189_v25 = vmul.f32 1.442695, %v167_v22  ;;  %v191_v26 = vmul.f32 1.442695, %v168_v23  ;;  %v193_v28 = vmul.f32 1.442695, %v169_v24 }
  0x5e   :  { %915 = vpow2.f32 %v183_v14  ;;  %v195_v45 = vmul.f32 1.442695, %v170_v33  ;;  %vm146_vm1 = vcmp.gt.f32.partialorder %v1279_v2, 20.0  ;;  %v172_v52 = vmin.f32 %v1310_v42, 20.0  ;;  %v369_v33 = vld [vmem:[#allocation12] sm:$0xff]  ;;  %s793_s30 = smul.f32 0.5, %s1402_s19 }
  0x5f   :  { %917 = vpow2.f32 %v185_v20  ;;  %v1319_v53 = vmul.f32 1.442695, %v171_v38  ;;  %vm147_vm4 = vcmp.gt.f32.partialorder %v1283_v6, 20.0  ;;  %vm148_vm5 = vcmp.gt.f32.partialorder %v1285_v7, 20.0  ;;  %s1636_s12 = smul.f32 %s1399_s4, %s100_s25  ;;  %s1148_s2 = smov [#allocation14]  }
  0x60   :  { %919 = vpow2.f32 %v187_v21  ;;  %v1348_v24 = vmul.f32 1.442695, %v172_v52  ;;  %vm149_vm8 = vcmp.gt.f32.partialorder %v1289_v11, 20.0  ;;  %vm150_vm9 = vcmp.gt.f32.partialorder %v1291_v13, 20.0  ;;  %s1631_s11 = smul.f32 %s793_s30, %s1402_s19  ;;  %s821_s1 = sshll.u32 %s1148_s2, 4  ;;  %s822_s1 = int_to_ptr.vmem [resolvable:$true] %s821_s1 }
  0x61   :  { %921 = vpow2.f32 %v189_v25  ;;  %vm151_vm14 = vcmp.gt.f32.partialorder %v1293_v15, 20.0  ;;  %vm152_vm15 = vcmp.gt.f32.partialorder %v1297_v18, 20.0  ;;  %s1149_s16 = smov [#allocation15]   ;;  %s1083_s18 = scalar_lea.vmem %s822_s1, 128 }
  0x62   :  { %923 = vpow2.f32 %v191_v26  ;;  %s796_s13 = sadd.f32 %s1636_s12, %s1631_s11  ;;  %s831_s17 = sshll.u32 %s1149_s16, 4  ;;  %s832_s17 = int_to_ptr.vmem [resolvable:$true] %s831_s17 }
  0x63   :  { %925 = vpow2.f32 %v193_v28  ;;  %p1084_p7 = scmp.ne.s32.totalorder %s822_s1, %s1083_s18  ;;  %p1088_p8 = scmp.lt.s32.totalorder %s822_s1, %s822_s1 }
  0x64   :  { %p1089_p9 = scmp.lt.s32.totalorder %s1083_s18, %s1083_s18 }
  0x65   :  { %v910_v29 = vpop.eup %909 }
  0x66   :  { %v912_v31 = vpop.eup %911  ;;  %v209_v32 = vadd.f32 1.0, %v910_v29  ;;  %v212_v34 = vmul.f32 -0.5, %v910_v29  ;;  %v215_v37 = vand.u32 2147483647, %v910_v29  ;;  %p1090_p10 = por %p1089_p9, %p1088_p8 }
  0x67   :  { %v218_v35 = vadd.f32 1.0, %v912_v31  ;;  %v914_v36 = vpop.eup %913  ;;  %v221_v40 = vmul.f32 -0.5, %v912_v31  ;;  %v224_v43 = vand.u32 2147483647, %v912_v31 }
  0x68   :  { %927 = vlog2.f32 %v209_v32  ;;  %v916_v39 = vpop.eup %915  ;;  %v227_v41 = vadd.f32 1.0, %v914_v36  ;;  %v213_v47 = vadd.f32 1.0, %v212_v34  ;;  %v230_v48 = vmul.f32 -0.5, %v914_v36  ;;  %p1091_p11 = pnand %p1090_p10, %p1084_p7 }
  0x69   :  { %929 = vlog2.f32 %v218_v35  ;;  %v236_v44 = vadd.f32 1.0, %v916_v39  ;;  %v239_v49 = vmul.f32 -0.5, %v916_v39  ;;  %v918_v50 = vpop.eup %917  ;;  %vm1314_vm2 = vcmp.lt.f32.partialorder %v215_v37, 0.0004427343 }
  0x6a   :  { %931 = vlog2.f32 %v227_v41  ;;  %v1321_v54 = vpop.eup %919  ;;  %v222_v55 = vadd.f32 1.0, %v221_v40  ;;  %v233_v56 = vand.u32 2147483647, %v914_v36  ;;  %v245_v57 = vadd.f32 1.0, %v918_v50  ;;  %v374_v40 = vld [vmem:[#allocation12 + $0x28] sm:$0xff] }
  0x6b   :  { %933 = vlog2.f32 %v236_v44  ;;  %v248_v58 = vmul.f32 -0.5, %v918_v50  ;;  %v1323_v59 = vpop.eup %921  ;;  %vm1325_vm3 = vcmp.lt.f32.partialorder %v224_v43, 0.0004427343  ;;  %v242_v61 = vand.u32 2147483647, %v916_v39  ;;  %v1364_v44 = vld [vmem:[#allocation9] sm:$0xff] }
  0x6c   :  { %v254_v62 = vadd.f32 1.0, %v1321_v54  ;;  %935 = vpow2.f32 %v195_v45  ;;  %v1331_v63 = vpop.eup %923  ;;  %v214_v3 = vmul.f32 %v910_v29, %v213_v47  ;;  %v231_v4 = vadd.f32 1.0, %v230_v48 }
  0x6d   :  { %v240_v5 = vadd.f32 1.0, %v239_v49  ;;  %937 = vlog2.f32 %v245_v57  ;;  %v1334_v8 = vpop.eup %925  ;;  %v251_v9 = vand.u32 2147483647, %v918_v50  ;;  %v257_v10 = vmul.f32 -0.5, %v1321_v54  ;;  %v1373_v49 = vld [vmem:[#allocation9 + $0x8] sm:$0xff] }
  0x6e   :  { %939 = vlog2.f32 %v254_v62  ;;  %v263_v12 = vadd.f32 1.0, %v1323_v59  ;;  %v223_v14 = vmul.f32 %v912_v31, %v222_v55  ;;  %vm1338_vm6 = vcmp.lt.f32.partialorder %v233_v56, 0.0004427343  ;;  %v371_v55 = vld [vmem:[#allocation12 + $0x10] sm:$0xff] }
  0x6f   :  { %v249_v17 = vadd.f32 1.0, %v248_v58  ;;  %v260_v20 = vand.u32 2147483647, %v1321_v54  ;;  %vm1343_vm7 = vcmp.lt.f32.partialorder %v242_v61, 0.0004427343  ;;  %v272_v23 = vadd.f32 1.0, %v1331_v63 }
  0x70   :  { %941 = vlog2.f32 %v263_v12  ;;  %v232_v28 = vmul.f32 %v914_v36, %v231_v4  ;;  %v241_v29 = vmul.f32 %v916_v39, %v240_v5  ;;  %v281_v31 = vadd.f32 1.0, %v1334_v8  ;;  %v370_v36 = vld [vmem:[#allocation12 + $0x8] sm:$0xff] }
  0x71   :  { %vm1353_vm10 = vcmp.lt.f32.partialorder %v251_v9, 0.0004427343  ;;  %v258_v35 = vadd.f32 1.0, %v257_v10  ;;  %943 = vlog2.f32 %v272_v23  ;;  %v250_v39 = vmul.f32 %v918_v50, %v249_v17 }
  0x72   :  { %v928_v21 = vpop.eup %927  ;;  %vm1359_vm11 = vcmp.lt.f32.partialorder %v260_v20, 0.0004427343  ;;  %v266_v41 = vmul.f32 -0.5, %v1323_v59  ;;  %945 = vlog2.f32 %v281_v31  ;;  %v275_v56 = vmul.f32 -0.5, %v1331_v63  ;;  %v116_v20 = vld [vmem:[#allocation9 + $0x18] sm:$0xff] }
  0x73   :  { %v930_v25 = vpop.eup %929  ;;  %v211_v26 = vmul.f32 0.6931472, %v928_v21  ;;  %v259_v61 = vmul.f32 %v1321_v54, %v258_v35  ;;  %v269_v62 = vand.u32 2147483647, %v1323_v59 }
  0x74   :  { %v220_v32 = vmul.f32 0.6931472, %v930_v25  ;;  %v932_v37 = vpop.eup %931  ;;  %v267_v9 = vadd.f32 1.0, %v266_v41  ;;  %v276_v23 = vadd.f32 1.0, %v275_v56  ;;  %v284_v25 = vmul.f32 -0.5, %v1334_v8 }
  0x75   :  { %v217_v38 = vsel %vm1314_vm2, %v214_v3, %v211_v26  ;;  %v934_v43 = vpop.eup %933  ;;  %v229_v48 = vmul.f32 0.6931472, %v932_v37  ;;  %vm1411_vm12 = vcmp.lt.f32.partialorder %v269_v62, 0.0004427343 }
  0x76   :  { %v226_v45 = vsel %vm1325_vm3, %v223_v14, %v220_v32  ;;  %v1371_v47 = vsel %vm145_vm0, %v1276_v0, %v217_v38  ;;  %v238_v52 = vmul.f32 0.6931472, %v934_v43  ;;  %v1382_v57 = vpop.eup %935  ;;  %v115_v14 = vld [vmem:[#allocation9 + $0x10] sm:$0xff]  ;;  %v277_v43 = vmul.f32 %v1331_v63, %v276_v23 }
  0x77   :  { %v1378_v50 = vsel %vm146_vm1, %v1279_v2, %v226_v45  ;;  %v385_v51 = vmul.f32 %v369_v33, %v1371_v47  ;;  %v235_v58 = vsel %vm1338_vm6, %v232_v28, %v229_v48  ;;  %v938_v2 = vpop.eup %937  ;;  %v268_v33 = vmul.f32 %v1323_v59, %v267_v9 }
  0x78   :  { %v386_v0 = vmul.f32 %v370_v36, %v1378_v50  ;;  %v244_v4 = vsel %vm1343_vm7, %v241_v29, %v238_v52  ;;  %v355_v5 = vsel %vm147_vm4, %v1283_v6, %v235_v58  ;;  %v940_v10 = vpop.eup %939  ;;  %v247_v17 = vmul.f32 0.6931472, %v938_v2  ;;  %v373_v36 = vld [vmem:[#allocation12 + $0x20] sm:$0xff] }
  0x79   :  { %v401_v3 = vadd.f32 %v385_v51, %v1364_v44  ;;  %v356_v54 = vsel %vm148_vm5, %v1285_v7, %v244_v4  ;;  %v387_v16 = vmul.f32 %v371_v55, %v355_v5  ;;  %v256_v22 = vmul.f32 0.6931472, %v940_v10  ;;  %v117_v55 = vld [vmem:[#allocation9 + $0x20] sm:$0xff]  ;;  %v1442_v4 = vld [vmem:[#allocation11 + $0x68] sm:$0xff] }
  0x7a   :  { %v402_v12 = vadd.f32 %v386_v0, %v1373_v49  ;;  %v388_v21 = vmul.f32 %v372_v60, %v356_v54  ;;  %v942_v6 = vpop.eup %941  ;;  %v253_v28 = vsel %vm1353_vm10, %v250_v39, %v247_v17  ;;  %v278_v29 = vand.u32 2147483647, %v1331_v63  ;;  %v1436_v58 = vld [vmem:[#allocation11 + $0x60] sm:$0xff]  ;;  %v118_v60 = vld [vmem:[#allocation9 + $0x28] sm:$0xff]  ;;  %v376_v17 = vld [vmem:[#allocation12 + $0x38] sm:$0xff] }
  0x7b   :  { %v290_v7 = vadd.f32 1.0, %v1382_v57  ;;  %v403_v31 = vadd.f32 %v387_v16, %v115_v14  ;;  %v262_v32 = vsel %vm1359_vm11, %v259_v61, %v256_v22  ;;  %v944_v37 = vpop.eup %943  ;;  %v357_v34 = vsel %vm149_vm8, %v1289_v11, %v253_v28  ;;  %v375_v16 = vld [vmem:[#allocation12 + $0x30] sm:$0xff] }
  0x7c   :  { %v420_v26 = vpack.c.bf16 %v402_v12, %v401_v3  ;;  %v404_v38 = vadd.f32 %v388_v21, %v116_v20  ;;  %v265_v39 = vmul.f32 0.6931472, %v942_v6  ;;  %v358_v59 = vsel %vm150_vm9, %v1291_v13, %v262_v32  ;;  %v946_v48 = vpop.eup %945  ;;  %v1476_v32 = vld [vmem:[#allocation11 + $0x78] sm:$0xff] }
  0x7d   :  { %947 = vlog2.f32 %v290_v7  ;;  %v274_v41 = vmul.f32 0.6931472, %v944_v37  ;;  %v285_v45 = vadd.f32 1.0, %v284_v25  ;;  %vm1424_vm13 = vcmp.lt.f32.partialorder %v278_v29, 0.0004427343  ;;  %v120_v37 = vld [vmem:[#allocation9 + $0x38] sm:$0xff] }
  0x7e   :  { %875 = vmatpush3.bf16.xpose.msra.mxu0 %v420_v26  ;;  %949 = vlog2.f32 %v1371_v47  ;;  %v287_v51 = vand.u32 2147483647, %v1334_v8  ;;  %v293_v52 = vmul.f32 -0.5, %v1382_v57  ;;  %v389_v13 = vmul.f32 %v373_v36, %v357_v34 }
  0x7f   :  { %876 = vmatprep.subr.bf16.mxu0 %v1146_v1  ;;  %951 = vlog2.f32 %v1378_v50  ;;  %v421_v63 = vpack.c.bf16 %v404_v38, %v403_v31  ;;  %v390_v56 = vmul.f32 %v374_v40, %v358_v59  ;;  %v271_v0 = vsel %vm1411_vm12, %v268_v33, %v265_v39  ;;  %v377_v38 = vld [vmem:[#allocation12 + $0x40] sm:$0xff]  ;;  %v1491_v59 = vld [vmem:[%s1670_s6] sm:$0x1] }
  0x80   :  { %953 = vpow2.f32 %v1319_v53  ;;  %v280_v61 = vsel %vm1424_vm13, %v277_v43, %v274_v41  ;;  %v283_v62 = vmul.f32 0.6931472, %v946_v48  ;;  %v286_v2 = vmul.f32 %v1334_v8, %v285_v45 }
  0x81   :  { %v294_v3 = vadd.f32 1.0, %v293_v52  ;;  %v1445_v5 = vstv %s1402_s19  ;;  %vm1447_vm0 = vcmp.lt.f32.partialorder %v287_v51, 0.0004427343  ;;  %v296_v53 = vand.u32 2147483647, %v1382_v57 }
  0x82   :  { %955 = vpow2.f32 %v1348_v24  ;;  %v405_v10 = vadd.f32 %v389_v13, %v117_v55  ;;  %v359_v12 = vsel %vm151_vm14, %v1293_v15, %v271_v0  ;;  %vm153_vm1 = vcmp.gt.f32.partialorder %v1299_v19, 20.0  ;;  %v378_v55 = vld [vmem:[#allocation12 + $0x48] sm:$0xff] }
  0x83   :  { %v173_v8 = vmin.f32 %v1436_v58, 20.0  ;;  %v406_v14 = vadd.f32 %v390_v56, %v118_v60  ;;  %v360_v54 = vsel %vm152_vm15, %v1297_v18, %v280_v61  ;;  %v174_v20 = vmin.f32 %v1442_v4, 20.0 }
  0x84   :  { %v102_v24 = vstv %s101_s20  ;;  %v289_v15 = vsel %vm1447_vm0, %v286_v2, %v283_v62  ;;  %v295_v21 = vmul.f32 %v1382_v57, %v294_v3  ;;  %v536_v6 = vsub.f32 %v1364_v44, %v1445_v5  ;;  %v1474_v57 = vld [vmem:[#allocation11 + $0x70] sm:$0xff]  ;;  %v121_v3 = vld [vmem:[#allocation9 + $0x40] sm:$0xff] }
  0x85   :  { %v201_v22 = vmul.f32 1.442695, %v173_v8  ;;  %v103_v23 = vmul.f32 1.442695, %v102_v24  ;;  %v537_v18 = vsub.f32 %v1373_v49, %v1445_v5  ;;  %vm1470_vm2 = vcmp.lt.f32.partialorder %v296_v53, 0.0004427343 }
  0x86   :  { %877 = vmatpush3.bf16.xpose.msra.mxu0 %v421_v63  ;;  %v203_v28 = vmul.f32 1.442695, %v174_v20  ;;  %v391_v29 = vmul.f32 %v375_v16, %v359_v12  ;;  %v392_v7 = vmul.f32 %v376_v17, %v360_v54  ;;  %v422_v35 = vpack.c.bf16 %v406_v14, %v405_v10  ;;  %v119_v44 = vld [vmem:[#allocation9 + $0x30] sm:$0xff]  ;;  %v122_v54 = vld [vmem:[#allocation9 + $0x48] sm:$0xff] }
  0x87   :  { %878 = vmatprep.subr.bf16.mxu0 %v1146_v1  ;;  %v948_v25 = vpop.eup %947  ;;  %957 = vpow2.f32 %v201_v22  ;;  %v361_v49 = vsel %vm153_vm1, %v1299_v19, %v289_v15  ;;  %vm154_vm3 = vcmp.gt.f32.partialorder %v1304_v27, 20.0  ;;  %v1486_v39 = vand.u32 127, %v683_v46 }
  0x88   :  { %v292_v31 = vmul.f32 0.6931472, %v948_v25  ;;  %v950_v33 = vpop.eup %949  ;;  %959 = vpow2.f32 %v203_v28  ;;  %v552_v19 = vmul.f32 %v536_v6, %v536_v6  ;;  %v553_v41 = vmul.f32 %v537_v18, %v537_v18 }
  0x89   :  { %v952_v34 = vpop.eup %951  ;;  %961 = vpow2.f32 %v103_v23  ;;  %v175_v43 = vmin.f32 %v1474_v57, 20.0  ;;  %v176_v45 = vmin.f32 %v1476_v32, 20.0  ;;  %v407_v48 = vadd.f32 %v391_v29, %v119_v44 }
  0x8a   :  { %v298_v36 = vsel %vm1470_vm2, %v295_v21, %v292_v31  ;;  %v1493_v40 = vpop.eup %953  ;;  %v408_v11 = vadd.f32 %v392_v7, %v120_v37  ;;  %v393_v51 = vmul.f32 %v377_v38, %v361_v49  ;;  %v755_v60 = vmin.f32 %v1491_v59, 20.0 }
  0x8b   :  { %v299_v52 = vadd.f32 1.0, %v1493_v40  ;;  %v362_v63 = vsel %vm154_vm3, %v1304_v27, %v298_v36  ;;  %v205_v56 = vmul.f32 1.442695, %v175_v43  ;;  %v207_v0 = vmul.f32 1.442695, %v176_v45 }
  0x8c   :  { %v1498_v13 = vpop.eup %955  ;;  %v471_v61 = vmul.f32 0.6931472, %v950_v33  ;;  %v1507_v62 = vstv %s100_s25  ;;  %v519_v2 = vmul.f32 %v1371_v47, %v1371_v47  ;;  %v302_v9 = vmul.f32 -0.5, %v1493_v40 }
  0x8d   :  { %963 = vlog2.f32 %v299_v52  ;;  %v308_v27 = vadd.f32 1.0, %v1498_v13  ;;  %v520_v53 = vmul.f32 %v1378_v50, %v1378_v50  ;;  %v394_v10 = vmul.f32 %v378_v55, %v362_v63 }
  0x8e   :  { %879 = vmatpush3.bf16.xpose.msra.mxu0 %v422_v35  ;;  %965 = vpow2.f32 %v205_v56  ;;  %v473_v12 = vmul.f32 0.6931472, %v952_v34  ;;  %v756_v8 = vmul.f32 1.442695, %v755_v60  ;;  %v423_v14 = vpack.c.bf16 %v408_v11, %v407_v48 }
  0x8f   :  { %880 = vmatprep.subr.bf16.mxu0 %v1146_v1  ;;  %967 = vpow2.f32 %v207_v0  ;;  %v311_v16 = vmul.f32 -0.5, %v1498_v13  ;;  %v409_v47 = vadd.f32 %v393_v51, %v121_v3  ;;  %vm155_vm4 = vcmp.gt.f32.partialorder %v1306_v30, 20.0  ;;  %v379_v51 = vld [vmem:[#allocation12 + $0x50] sm:$0xff] }
  0x90   :  { %969 = vlog2.f32 %v308_v27  ;;  %v503_v20 = vsub.f32 %v1507_v62, %v471_v61  ;;  %v568_v24 = vadd.f32 %v552_v19, %v519_v2  ;;  %vm1147_vm5 = vmmov 0  }
  0x91   :  { %v1516_v17 = vpop.eup %957  ;;  %890 = vmatprep.mubr.msk.bf16.mxu0 %vm1147_vm5, %v1146_v1  ;;  %v303_v15 = vadd.f32 1.0, %v302_v9  ;;  %v569_v22 = vadd.f32 %v553_v41, %v520_v53  ;;  %971 = vpow2.f32 %v756_v8  ;;  %v410_v25 = vadd.f32 %v394_v10, %v122_v54  ;;  %v123_v10 = vld [vmem:[#allocation9 + $0x50] sm:$0xff] }
  0x92   :  { %v1521_v50 = vpop.eup %959  ;;  %v317_v21 = vadd.f32 1.0, %v1516_v17  ;;  %v305_v6 = vand.u32 2147483647, %v1493_v40  ;;  %v314_v18 = vand.u32 2147483647, %v1498_v13  ;;  %v312_v28 = vadd.f32 1.0, %v311_v16 }
  0x93   :  { %v962_v23 = vpop.eup %961  ;;  %v326_v26 = vadd.f32 1.0, %v1521_v50  ;;  %v504_v7 = vsub.f32 %v1507_v62, %v473_v12  ;;  %vm156_vm6 = vcmp.gt.f32.partialorder %v1310_v42, 20.0  ;;  %v320_v31 = vmul.f32 -0.5, %v1516_v17  ;;  %v380_v12 = vld [vmem:[#allocation12 + $0x58] sm:$0xff] }
  0x94   :  { %973 = vlog2.f32 %v317_v21  ;;  %v1527_v29 = vmul.f32 0.5, %v962_v23  ;;  %v329_v33 = vmul.f32 -0.5, %v1521_v50  ;;  %v304_v35 = vmul.f32 %v1493_v40, %v303_v15  ;;  %v124_v15 = vld [vmem:[#allocation9 + $0x58] sm:$0xff] }
  0x95   :  { %975 = vlog2.f32 %v326_v26  ;;  %vm688_vm7 = vcmp.lt.s32.totalorder %v1486_v39, 32  ;;  %v424_v38 = vpack.c.bf16 %v410_v25, %v409_v47  ;;  %vm1538_vm8 = vcmp.lt.f32.partialorder %v305_v6, 0.0004427343 }
  0x96   :  { %881 = vmatpush3.bf16.xpose.msra.mxu0 %v423_v14  ;;  %v584_v44 = vmul.f32 %v568_v24, %v1527_v29  ;;  %v585_v37 = vmul.f32 %v569_v22, %v1527_v29  ;;  %vm1542_vm9 = vcmp.lt.f32.partialorder %v314_v18, 0.0004427343  ;;  %vm157_vm10 = vcmp.gt.f32.partialorder %v1436_v58, 20.0 }
  0x97   :  { %882 = vmatprep.subr.bf16.mxu0 %v1146_v1  ;;  %v964_v49 = vpop.eup %963  ;;  %v323_v40 = vand.u32 2147483647, %v1516_v17  ;;  %v313_v43 = vmul.f32 %v1498_v13, %v312_v28  ;;  %v321_v52 = vadd.f32 1.0, %v320_v31  ;;  %v330_v63 = vadd.f32 1.0, %v329_v33  ;;  %v381_v31 = vld [vmem:[#allocation12 + $0x60] sm:$0xff] }
  0x98   :  { %v1548_v19 = vpop.eup %965  ;;  %v301_v41 = vmul.f32 0.6931472, %v964_v49  ;;  %v600_v45 = vadd.f32 %v584_v44, %v503_v20  ;;  %v601_v48 = vadd.f32 %v585_v37, %v504_v7  ;;  %v332_v55 = vand.u32 2147483647, %v1521_v50  ;;  %v125_v37 = vld [vmem:[#allocation9 + $0x60] sm:$0xff] }
  0x99   :  { %v1551_v11 = vpop.eup %967  ;;  %v335_v56 = vadd.f32 1.0, %v1548_v19  ;;  %vm1561_vm11 = vcmp.lt.f32.partialorder %v323_v40, 0.0004427343  ;;  %v338_v16 = vmul.f32 -0.5, %v1548_v19  ;;  %v322_v47 = vmul.f32 %v1516_v17, %v321_v52 }
  0x9a   :  { %v970_v0 = vpop.eup %969  ;;  %v307_v60 = vsel %vm1538_vm8, %v304_v35, %v301_v41  ;;  %v848_v61 = vadd.f32 -0.5, %v600_v45  ;;  %v849_v2 = vadd.f32 -0.5, %v601_v48  ;;  %v344_v3 = vadd.f32 1.0, %v1551_v11  ;;  %v382_v35 = vld [vmem:[#allocation12 + $0x68] sm:$0xff] }
  0x9b   :  { %v310_v13 = vmul.f32 0.6931472, %v970_v0  ;;  %v363_v9 = vsel %vm155_vm4, %v1306_v30, %v307_v60  ;;  %977 = vlog2.f32 %v335_v56  ;;  %v1565_v53 = vpop.eup %971  ;;  %v331_v22 = vmul.f32 %v1521_v50, %v330_v63  ;;  %v126_v41 = vld [vmem:[#allocation9 + $0x68] sm:$0xff] }
  0x9c   :  { %v395_v8 = vmul.f32 %v379_v51, %v363_v9  ;;  %v705_v14 = vsel %vm688_vm7, %v848_v61, 0.0  ;;  %v706_v54 = vsel %vm688_vm7, %v849_v2, 0.0  ;;  %979 = vlog2.f32 %v344_v3  ;;  %v383_v2 = vld [vmem:[#allocation12 + $0x70] sm:$0xff] }
  0x9d   :  { %v316_v30 = vsel %vm1542_vm9, %v313_v43, %v310_v13  ;;  %v722_v20 = vadd.f32 %v706_v54, %v705_v14  ;;  %vm1580_vm12 = vcmp.lt.f32.partialorder %v332_v55, 0.0004427343  ;;  %v347_v25 = vmul.f32 -0.5, %v1551_v11 }
  0x9e   :  { %883 = vmatpush3.bf16.xpose.msra.mxu0 %v424_v38  ;;  %v974_v24 = vpop.eup %973  ;;  %v364_v21 = vsel %vm156_vm6, %v1310_v42, %v316_v30  ;;  %v411_v26 = vadd.f32 %v395_v8, %v123_v10  ;;  %v758_v28 = vadd.f32 1.0, %v1565_v53  ;;  %vm158_vm13 = vcmp.gt.f32.partialorder %v1442_v4, 20.0  ;;  %v384_v10 = vld [vmem:[#allocation12 + $0x78] sm:$0xff] }
  0x9f   :  { %884 = vmatprep.subr.bf16.mxu0 %v1146_v1  ;;  %v976_v6 = vpop.eup %975  ;;  %v396_v18 = vmul.f32 %v380_v12, %v364_v21  ;;  %v319_v17 = vmul.f32 0.6931472, %v974_v24  ;;  %737 = vadd.xlane.f32.xlu0 %v722_v20  ;;  %v339_v42 = vadd.f32 1.0, %v338_v16  ;;  %v341_v44 = vand.u32 2147483647, %v1548_v19  ;;  %v127_v12 = vld [vmem:[#allocation9 + $0x70] sm:$0xff] }
  0xa0   :  { %v328_v7 = vmul.f32 0.6931472, %v976_v6  ;;  %981 = vlog2.f32 %v758_v28  ;;  %v348_v34 = vadd.f32 1.0, %v347_v25  ;;  %v761_v36 = vmul.f32 -0.5, %v1565_v53  ;;  %v128_v16 = vld [vmem:[#allocation9 + $0x78] sm:$0xff] }
  0xa1   :  { %v412_v33 = vadd.f32 %v396_v18, %v124_v15  ;;  %v325_v50 = vsel %vm1561_vm11, %v322_v47, %v319_v17  ;;  %v350_v48 = vand.u32 2147483647, %v1551_v11  ;;  %v340_v52 = vmul.f32 %v1548_v19, %v339_v42  ;;  %v752_v47 = vld [vmem:[%s1669_s5] sm:$0x1] }
  0xa2   :  { %v334_v49 = vsel %vm1580_vm12, %v331_v22, %v328_v7  ;;  %v365_v38 = vsel %vm157_vm10, %v1436_v58, %v325_v50  ;;  %vm159_vm14 = vcmp.gt.f32.partialorder %v1474_v57, 20.0  ;;  %vm342_vm15 = vcmp.lt.f32.partialorder %v341_v44, 0.0004427343  ;;  %v418_v6 = vld [vmem:[#allocation8] sm:$0xff] }
  0xa3   :  { %v425_v40 = vpack.c.bf16 %v412_v33, %v411_v26  ;;  %v366_v43 = vsel %vm158_vm13, %v1442_v4, %v334_v49  ;;  %v397_v45 = vmul.f32 %v381_v31, %v365_v38  ;;  %v349_v0 = vmul.f32 %v1551_v11, %v348_v34 }
  0xa4   :  { %v398_v51 = vmul.f32 %v382_v35, %v366_v43  ;;  %v762_v60 = vadd.f32 1.0, %v761_v36  ;;  %vm1604_vm0 = vcmp.lt.f32.partialorder %v350_v48, 0.0004427343  ;;  %v764_v19 = vand.u32 2147483647, %v1565_v53 }
  0xa5   :  { %v978_v63 = vpop.eup %977  ;;  %v413_v55 = vadd.f32 %v397_v45, %v125_v37  ;;  %vm160_vm1 = vcmp.gt.f32.partialorder %v1476_v32, 20.0  ;;  %vm754_vm3 = vcmp.gt.f32.partialorder %v1491_v59, 20.0  ;;  %v419_v26 = vpack.c.bf16 %v418_v6, %v418_v6  ;;  %v768_v43 = vld [vmem:[%s1671_s7] sm:$0x1] }
  0xa6   :  { %885 = vmatpush3.bf16.xpose.msra.mxu0 %v425_v40  ;;  %v414_v58 = vadd.f32 %v398_v51, %v126_v41  ;;  %v337_v56 = vmul.f32 0.6931472, %v978_v63  ;;  %v980_v4 = vpop.eup %979  ;;  %v763_v14 = vmul.f32 %v1565_v53, %v762_v60  ;;  %vm765_vm2 = vcmp.lt.f32.partialorder %v764_v19, 0.0004427343 }
  0xa7   :  { %886 = vmatprep.subr.bf16.mxu0 %v1146_v1  ;;  %v346_v13 = vmul.f32 0.6931472, %v980_v4  ;;  %v784_v53 = vsub.f32 %v752_v47, %v1445_v5  ;;  %vm791_vm4 = vcmp.lt.s32.totalorder %v1486_v39, 16  ;;  %vm798_vm5 = vcmask 1040384  }
  0xa8   :  { %v343_v3 = vsel %vm342_vm15, %v340_v52, %v337_v56  ;;  %v426_v9 = vpack.c.bf16 %v414_v58, %v413_v55  ;;  %v774_v48 = vshrl.u32 %v683_v46, 7 }
  0xa9   :  { %v367_v27 = vsel %vm159_vm14, %v1474_v57, %v343_v3  ;;  %v352_v11 = vsel %vm1604_vm0, %v349_v0, %v346_v13  ;;  %v785_v25 = vmul.f32 %v784_v53, %v784_v53 }
  0xaa   :  { %v399_v8 = vmul.f32 %v383_v2, %v367_v27  ;;  %v982_v54 = vpop.eup %981  ;;  %v368_v30 = vsel %vm160_vm1, %v1476_v32, %v352_v11  ;;  %v775_v52 = vsub.s32 0, %v774_v48 }
  0xab   :  { %v400_v20 = vmul.f32 %v384_v10, %v368_v30  ;;  %v760_v57 = vmul.f32 0.6931472, %v982_v54 }
  0xac   :  { %v415_v24 = vadd.f32 %v399_v8, %v127_v12 }
  0xad   :  { %v416_v15 = vadd.f32 %v400_v20, %v128_v16  ;;  %v766_v21 = vsel %vm765_vm2, %v763_v14, %v760_v57 }
  0xae   :  { %887 = vmatpush3.bf16.xpose.msra.mxu0 %v426_v9  ;;  %v767_v22 = vsel %vm754_vm3, %v1491_v59, %v766_v21 }
  0xaf   :  { %888 = vmatprep.subr.bf16.mxu0 %v1146_v1  ;;  %983 = vlog2.f32 %v767_v22  ;;  %v427_v32 = vpack.c.bf16 %v416_v15, %v415_v24  ;;  %v783_v23 = vmul.f32 %v767_v22, %v767_v22  ;;  %v769_v45 = vmul.f32 %v768_v43, %v767_v22 }
  0xb1   :  { %v786_v18 = vadd.f32 %v785_v25, %v783_v23  ;;  %v770_v51 = vadd.f32 %v769_v45, %v752_v47 }
  0xb3   :  { %v787_v7 = vmul.f32 %v786_v18, %v1527_v29  ;;  %v776_v63 = vrot.slane %v770_v51, %v775_v52 }
  0xb6   :  { %889 = vmatpush3.bf16.xpose.msra.mxu0 %v427_v32 }
  0xb9   :  { %v984_v17 = vpop.eup %983 }
  0xba   :  { %v781_v28 = vmul.f32 0.6931472, %v984_v17 }
  0xbc   :  { %v782_v1 = vsub.f32 %v1507_v62, %v781_v28 }
  0xbd   :  { %891 = vmatmul.mubr.bf16.vlgmr.msra.gmra.mrb[0].mxu0 %v419_v26 }
  0xbe   :  { %v788_v31 = vadd.f32 %v787_v7, %v782_v1 }
  0xc0   :  { %v864_v5 = vadd.f32 -0.5, %v788_v31 }
  0xc2   :  { %v792_v59 = vsel %vm791_vm4, %v864_v5, 0.0 }
  0xc3   :  { %v799_v42 = vsel %vm798_vm5, %v792_v59, 0.0 }
  0xc4   :  { %800 = vadd.xlane.f32.xlu0 %v799_v42 }
 0x12c   :  { %v738_v33 = vpop.xlane.xlu0 %737 }
 0x12d   :  { %v739_v50 = vrot.slane %v738_v33, 4 }
 0x12f   :  { %v740_v35 = vadd.f32 %v739_v50, %v738_v33 }
 0x131   :  { %v741_v44 = vrot.slane %v740_v35, 2 }
 0x133   :  { %v742_v37 = vadd.f32 %v741_v44, %v740_v35 }
 0x135   :  { %v743_v49 = vrot.slane %v742_v37, 1 }
 0x137   :  { %v744_v38 = vadd.f32 %v743_v49, %v742_v37 }
 0x139   :  { %894 = vpush %v744_v38 }
 0x151   :  { %v801_v62 = vpop.xlane.xlu0 %800 }
 0x152   :  { %v802_v29 = vrot.slane %v801_v62, 4 }
 0x154   :  { %v803_v39 = vadd.f32 %v802_v29, %v801_v62 }
 0x156   :  { %v804_v34 = vrot.slane %v803_v39, 2 }
 0x158   :  { %v805_v36 = vadd.f32 %v804_v34, %v803_v39 }
 0x15a   :  { %v806_v40 = vrot.slane %v805_v36, 1 }
 0x15c   :  { %v807_v41 = vadd.f32 %v806_v40, %v805_v36 }
 0x15e   :  { %896 = vpush %v807_v41 }
 0x16a   :  { %s895_s10 = spop %894 }
 0x18f   :  { %s897_s7 = spop %896 }
 0x190   :  { %v462_v55 = vpop.f32.mrb[0].mxu0  ;;  %s809_s15 = sadd.f32 %s897_s7, %s895_s10 }
 0x191   :  { %v778_v58 = vadd.f32 %v776_v63, %v462_v55  ;;  %v892_v56 = vpop.f32.mrb[1].mxu0 }
 0x192   :  { %v465_v46 = vpop.f32.mrb[2].mxu0 }
 0x193   :  { %779 = vst [vmem:[#allocation14] sm:$0xff] %v778_v58  ;;  %v893_v0 = vpop.f32.mrb[3].mxu0 }
 0x194   :  { %1094 = shalt.err (!%p1091_p11)
}
 0x195   :  { %s1095_s23 = scalar_lea.hbm %s1672_s8, 128 }
 0x196   :  { %p1096_p12 = scmp.ne.s32.totalorder %s1672_s8, %s1095_s23  ;;  %p1099_p13 = scmp.lt.u32.totalorder %s1095_s23, %s1672_s8 }
 0x198   :  { %p1101_p0 = pnand %p1099_p13, %p1096_p12 }
 0x19a   :  { %1104 = shalt.err (!%p1101_p0)
}
 0x19b   :  { %824 = dma.vmem_to_hbm [thread:$0]  %s822_s1, 128, %s1672_s8, [#allocation6]  }
 0x19c   :  { %s812_s20 = sadd.f32 %s809_s15, %s796_s13  ;;  %s1105_s25 = scalar_lea.vmem %s832_s17, 16 }
 0x19d   :  { %p1106_p1 = scmp.ne.s32.totalorder %s832_s17, %s1105_s25  ;;  %s1109_s26 = scalar_lea.vmem %s832_s17, 32 }
 0x19e   :  { %v813_v60 = vstv %s812_s20  ;;  %p1110_p2 = scmp.lt.s32.totalorder %s832_s17, %s832_s17  ;;  %p1111_p3 = scmp.lt.s32.totalorder %s1109_s26, %s1105_s25 }
 0x19f   :  { %814 = vst [vmem:[#allocation15] sm:$0x1] %v813_v60 }
 0x1a0   :  { %p1112_p4 = por %p1111_p3, %p1110_p2 }
 0x1a2   :  { %p1113_p5 = pnand %p1112_p4, %p1106_p1 }
 0x1a4   :  { %1116 = shalt.err (!%p1113_p5)
}
 0x1a5   :  { %s1117_s28 = scalar_lea.hbm %s1673_s9, 16 }
 0x1a6   :  { %p1118_p6 = scmp.ne.s32.totalorder %s1673_s9, %s1117_s28  ;;  %p1121_p7 = scmp.lt.u32.totalorder %s1117_s28, %s1673_s9 }
 0x1a8   :  { %p1123_p8 = pnand %p1121_p7, %p1118_p6 }
 0x1aa   :  { %1126 = shalt.err (!%p1123_p8)
}
 0x1ab   :  { %834 = dma.vmem_to_hbm [thread:$0]  %s832_s17, 16, %s1673_s9, [#allocation16]  }
 0x1ac   :  { %1135 = dma.done.wait [#allocation6], 128  }
 0x1ad   :  { %1136 = vsyncadd [#allocation6], 4294967168 }
 0x1ae   :  { %1137 = dma.done.wait [#allocation16], 16  }
 0x1af   :  { %1138 = vsyncadd [#allocation16], 4294967280 }
 0x1b0   :  { %841 = vsyncpa [#allocation5], 1 }
 0x1b1   :  { %842 = vsyncpa [#allocation10], 1 }
 0x1b2   :  { %843 = vsyncpa [#allocation13], 1 }
 0x1b3   :  { %844 = vsyncpa [#allocation6], 1 }
 0x1b4   :  { %845 = vsyncpa [#allocation16], 1 }
 0x1b5   :  { %846 = vsyncpa [#allocation7], 1 }

</bundles_post_ra>
